<compile_context>
chip_gen: v7x
topology: tpu7x:2x2x1
jax: 0.10.0
libtpu: 0.0.40
codegen_flags: <defaults>
</compile_context>

<pallas_src>
import math

import jax
import jax.numpy as jnp
from jax.experimental import pallas as pl
from jax.experimental.pallas import tpu as pltpu

# ----------------- module hyperparameters (deterministic, from __init__) -----------------
T_SPAN = (0.0, 10.0)
DT = T_SPAN[1] - T_SPAN[0]          # registered buffer `dt`
NUM_OUTPUTS = 8
NUM_HIDDEN = 32
NUM_LAYERS = 2                      # -> 1 input layer + 1 hidden layer + 1 output layer
SQRT3 = math.sqrt(3.0)


def _silu(x):
    # SiLU(x) = x * sigmoid(x); written explicitly so the kernel and the reference use the
    # exact same formula (one exp on the EUP + one divide per element).
    return x * (1.0 / (1.0 + jnp.exp(-x)))


# ------------------------------------- Pallas kernel -------------------------------------
def _marginal_fcnn_kernel(t_ref, w1_ref, b1_ref, wh_ref, bh_ref, wo_ref, bo_ref, o_ref):
    # t_ref:  (1, TN)          block of time stamps (row vector, TN on the lane axis)
    # w1_ref: (H, 1), b1_ref: (H, 1)        input Linear(1, H)
    # wh_ref: (NL, H, H), bh_ref: (NL, H, 1) hidden Linear(H, H) stack (NL = num_layers - 1)
    # wo_ref: (D, H), bo_ref: (D, 1)        output Linear(H, D)
    # o_ref:  (D, TN)          lane-dense output block
    t = t_ref[...]                                           # (1, TN)

    # MarginalFCNN input rescaling: (t * 2/dt - 1) * sqrt(3)   (compile-time constants)
    t_hat = t * (2.0 * SQRT3 / DT) - SQRT3                   # (1, TN)

    # Input layer Linear(1, H): outer product -> pure VPU broadcast, no MXU needed.
    h = _silu(w1_ref[...] * t_hat + b1_ref[...])             # (H, TN)

    # Hidden layers Linear(H, H) on the MXU (static Python loop over the stacked weights).
    for l in range(wh_ref.shape[0]):
        h = _silu(jnp.dot(wh_ref[l], h, preferred_element_type=jnp.float32) + bh_ref[l])

    # Output layer Linear(H, D); output_transform = Identity.
    out = jnp.dot(wo_ref[...], h, preferred_element_type=jnp.float32) + bo_ref[...]
    o_ref[...] = out.astype(o_ref.dtype)                     # (D, TN), unmasked stores


def marginal_fcnn_forward(t, params, *, tn=1024):
    """m = FCNN((t * 2/dt - 1) * sqrt(3)),  t: (N,)  ->  (N, num_outputs)."""
    w1, b1, wh, bh, wo, bo = params
    t = jnp.atleast_1d(t)                                    # mirrors the dim()==0 unsqueeze
    n = t.shape[0]
    H = w1.shape[0]
    D = wo.shape[0]
    NL = wh.shape[0]

    # Ragged batch: pad up to a multiple of the tile and slice the result back.
    n_blocks = pl.cdiv(n, tn)
    n_pad = n_blocks * tn
    t_row = jnp.pad(t.astype(jnp.float32), (0, n_pad - n)).reshape(1, n_pad)

    out_t = pl.pallas_call(
        _marginal_fcnn_kernel,
        out_shape=jax.ShapeDtypeStruct((D, n_pad), jnp.float32),
        grid_spec=pltpu.PrefetchScalarGridSpec(
            num_scalar_prefetch=0,
            grid=(n_blocks,),
            in_specs=[
                pl.BlockSpec((1, tn), lambda i: (0, i)),         # t block (lane-dense)
                pl.BlockSpec((H, 1), lambda i: (0, 0)),          # w1 (full)
                pl.BlockSpec((H, 1), lambda i: (0, 0)),          # b1 (full)
                pl.BlockSpec((NL, H, H), lambda i: (0, 0, 0)),   # hidden weights (full)
                pl.BlockSpec((NL, H, 1), lambda i: (0, 0, 0)),   # hidden biases (full)
                pl.BlockSpec((D, H), lambda i: (0, 0)),          # w_out (full)
                pl.BlockSpec((D, 1), lambda i: (0, 0)),          # b_out (full)
            ],
            out_specs=pl.BlockSpec((D, tn), lambda i: (0, i)),   # (D, TN) lane-dense output
        ),
        compiler_params=pltpu.CompilerParams(dimension_semantics=("parallel",)),
    )(t_row, w1, b1, wh, bh, wo, bo)

    return out_t[:, :n].T                                    # (N, D), module output layout


# ------------------------------ reference + parameter setup ------------------------------
def _marginal_fcnn_ref(t, params):
    """Plain-JAX reference of the same forward pass (f32, HIGHEST-precision matmuls)."""
    w1, b1, wh, bh, wo, bo = params
    t_hat = (t.astype(jnp.float32) * (2.0 / DT) - 1.0) * SQRT3          # (N,)
    h = _silu(w1 * t_hat[None, :] + b1)                                  # (H, N)
    for l in range(wh.shape[0]):
        h = _silu(jnp.dot(wh[l], h, precision=jax.lax.Precision.HIGHEST) + bh[l])
    out = jnp.dot(wo, h, precision=jax.lax.Precision.HIGHEST) + bo       # (D, N)
    return out.T                                                         # (N, D)


def build_marginal_fcnn_params(key, num_hidden=NUM_HIDDEN, num_outputs=NUM_OUTPUTS,
                               num_layers=NUM_LAYERS):
    """Deterministic nn.Linear-style init (U(-1/sqrt(fan_in), 1/sqrt(fan_in)) for w and b)."""
    assert num_layers >= 2

    def linear_init(k, fan_out, fan_in):
        kw, kb = jax.random.split(k)
        bound = 1.0 / math.sqrt(fan_in)
        w = jax.random.uniform(kw, (fan_out, fan_in), jnp.float32, -bound, bound)
        b = jax.random.uniform(kb, (fan_out, 1), jnp.float32, -bound, bound)
        return w, b

    keys = jax.random.split(key, num_layers + 1)
    w1, b1 = linear_init(keys[0], num_hidden, 1)
    wh, bh = [], []
    for l in range(num_layers - 1):
        w, b = linear_init(keys[1 + l], num_hidden, num_hidden)
        wh.append(w)
        bh.append(b)
    wo, bo = linear_init(keys[num_layers], num_outputs, num_hidden)
    return w1, b1, jnp.stack(wh), jnp.stack(bh), wo, bo


# -------------------------------------------- main --------------------------------------------
if __name__ == "__main__":
    key = jax.random.PRNGKey(0)
    k_t, k_p = jax.random.split(key)

    # Batch of time stamps; deliberately NOT a multiple of the tile to exercise cdiv + padding.
    N = 500
    t = jax.random.uniform(k_t, (N,), minval=T_SPAN[0], maxval=T_SPAN[1], dtype=jnp.float32)

    params = build_marginal_fcnn_params(k_p)

    # tn=256 keeps the grid at 2 steps for this small demo (both v7x TensorCores get work);
    # for large N leave the default tn=1024+ (per-block VMEM is only a few KiB).
    out = marginal_fcnn_forward(t, params, tn=256)
    out = jax.block_until_ready(out)

    ref = _marginal_fcnn_ref(t, params)
    assert out.shape == (N, NUM_OUTPUTS)
    err = float(jnp.max(jnp.abs(out - ref)))
    assert jnp.allclose(out, ref, atol=2e-3, rtol=2e-3), err

    print("KERNEL_OK")
</pallas_src>

<mosaic_0001>
module attributes {stable_mosaic.version = 11 : i64} {
  func.func @_marginal_fcnn_kernel(%arg0: i32, %arg1: memref<1x256xf32, #tpu.memory_space<vmem>>, %arg2: memref<32x1xf32, #tpu.memory_space<vmem>>, %arg3: memref<32x1xf32, #tpu.memory_space<vmem>>, %arg4: memref<1x32x32xf32, #tpu.memory_space<vmem>>, %arg5: memref<1x32x1xf32, #tpu.memory_space<vmem>>, %arg6: memref<8x32xf32, #tpu.memory_space<vmem>>, %arg7: memref<8x1xf32, #tpu.memory_space<vmem>>, %arg8: memref<8x256xf32, #tpu.memory_space<vmem>>) attributes {dimension_semantics = [#tpu.dimension_semantics<parallel>], iteration_bounds = array<i64: 2>, scalar_prefetch = 0 : i64, scratch_operands = 0 : i64, tpu.core_type = #tpu.core_type<tc>, window_params = [{transform_indices = @transform_0, window_bounds = array<i64: 1, 256>}, {pipeline_mode = #tpu.pipeline_mode<synchronous>, transform_indices = @transform_1, window_bounds = array<i64: 32, 1>}, {pipeline_mode = #tpu.pipeline_mode<synchronous>, transform_indices = @transform_2, window_bounds = array<i64: 32, 1>}, {pipeline_mode = #tpu.pipeline_mode<synchronous>, transform_indices = @transform_3, window_bounds = array<i64: 1, 32, 32>}, {pipeline_mode = #tpu.pipeline_mode<synchronous>, transform_indices = @transform_4, window_bounds = array<i64: 1, 32, 1>}, {pipeline_mode = #tpu.pipeline_mode<synchronous>, transform_indices = @transform_5, window_bounds = array<i64: 8, 32>}, {pipeline_mode = #tpu.pipeline_mode<synchronous>, transform_indices = @transform_6, window_bounds = array<i64: 8, 1>}, {transform_indices = @transform_7, window_bounds = array<i64: 8, 256>}]} {
    %c0 = arith.constant 0 : index
    %c0_0 = arith.constant 0 : index
    %0 = vector.load %arg1[%c0, %c0_0] : memref<1x256xf32, #tpu.memory_space<vmem>>, vector<1x256xf32>
    %cst = arith.constant 0.346410155 : f32
    %1 = vector.broadcast %cst : f32 to vector<1x256xf32>
    %2 = arith.mulf %0, %1 : vector<1x256xf32>
    %cst_1 = arith.constant 1.73205078 : f32
    %3 = vector.broadcast %cst_1 : f32 to vector<1x256xf32>
    %4 = arith.subf %2, %3 : vector<1x256xf32>
    %c0_2 = arith.constant 0 : index
    %c0_3 = arith.constant 0 : index
    %5 = vector.load %arg2[%c0_2, %c0_3] : memref<32x1xf32, #tpu.memory_space<vmem>>, vector<32x1xf32>
    %6 = vector.broadcast %5 : vector<32x1xf32> to vector<32x256xf32>
    %7 = vector.broadcast %4 : vector<1x256xf32> to vector<32x256xf32>
    %8 = arith.mulf %6, %7 : vector<32x256xf32>
    %c0_4 = arith.constant 0 : index
    %c0_5 = arith.constant 0 : index
    %9 = vector.load %arg3[%c0_4, %c0_5] : memref<32x1xf32, #tpu.memory_space<vmem>>, vector<32x1xf32>
    %10 = vector.broadcast %9 : vector<32x1xf32> to vector<32x256xf32>
    %11 = arith.addf %8, %10 : vector<32x256xf32>
    %cst_6 = arith.constant 0.000000e+00 : f32
    %12 = vector.broadcast %cst_6 : f32 to vector<32x256xf32>
    %13 = arith.subf %12, %11 : vector<32x256xf32>
    %14 = math.exp %13 : vector<32x256xf32>
    %cst_7 = arith.constant 1.000000e+00 : f32
    %15 = vector.broadcast %cst_7 : f32 to vector<32x256xf32>
    %16 = arith.addf %15, %14 : vector<32x256xf32>
    %cst_8 = arith.constant 1.000000e+00 : f32
    %17 = vector.broadcast %cst_8 : f32 to vector<32x256xf32>
    %18 = arith.divf %17, %16 : vector<32x256xf32>
    %19 = arith.mulf %11, %18 : vector<32x256xf32>
    %c0_9 = arith.constant 0 : index
    %c0_10 = arith.constant 0 : index
    %c0_11 = arith.constant 0 : index
    %20 = vector.load %arg4[%c0_9, %c0_10, %c0_11] : memref<1x32x32xf32, #tpu.memory_space<vmem>>, vector<1x32x32xf32>
    %21 = vector.shape_cast %20 : vector<1x32x32xf32> to vector<32x32xf32>
    %cst_12 = arith.constant dense<0.000000e+00> : vector<32x256xf32>
    %22 = tpu.matmul %21, %19, %cst_12 {dimension_numbers = #tpu.dot_dimension_numbers<[1], [0], [0], [1], [0, 0, 1, 1], [], []>} : vector<32x32xf32>, vector<32x256xf32>, vector<32x256xf32> -> vector<32x256xf32>
    %c0_13 = arith.constant 0 : index
    %c0_14 = arith.constant 0 : index
    %c0_15 = arith.constant 0 : index
    %23 = vector.load %arg5[%c0_13, %c0_14, %c0_15] : memref<1x32x1xf32, #tpu.memory_space<vmem>>, vector<1x32x1xf32>
    %24 = vector.shape_cast %23 : vector<1x32x1xf32> to vector<32x1xf32>
    %25 = vector.broadcast %24 : vector<32x1xf32> to vector<32x256xf32>
    %26 = arith.addf %22, %25 : vector<32x256xf32>
    %cst_16 = arith.constant 0.000000e+00 : f32
    %27 = vector.broadcast %cst_16 : f32 to vector<32x256xf32>
    %28 = arith.subf %27, %26 : vector<32x256xf32>
    %29 = math.exp %28 : vector<32x256xf32>
    %cst_17 = arith.constant 1.000000e+00 : f32
    %30 = vector.broadcast %cst_17 : f32 to vector<32x256xf32>
    %31 = arith.addf %30, %29 : vector<32x256xf32>
    %cst_18 = arith.constant 1.000000e+00 : f32
    %32 = vector.broadcast %cst_18 : f32 to vector<32x256xf32>
    %33 = arith.divf %32, %31 : vector<32x256xf32>
    %34 = arith.mulf %26, %33 : vector<32x256xf32>
    %c0_19 = arith.constant 0 : index
    %c0_20 = arith.constant 0 : index
    %35 = vector.load %arg6[%c0_19, %c0_20] : memref<8x32xf32, #tpu.memory_space<vmem>>, vector<8x32xf32>
    %cst_21 = arith.constant dense<0.000000e+00> : vector<8x256xf32>
    %36 = tpu.matmul %35, %34, %cst_21 {dimension_numbers = #tpu.dot_dimension_numbers<[1], [0], [0], [1], [0, 0, 1, 1], [], []>} : vector<8x32xf32>, vector<32x256xf32>, vector<8x256xf32> -> vector<8x256xf32>
    %c0_22 = arith.constant 0 : index
    %c0_23 = arith.constant 0 : index
    %37 = vector.load %arg7[%c0_22, %c0_23] : memref<8x1xf32, #tpu.memory_space<vmem>>, vector<8x1xf32>
    %38 = vector.broadcast %37 : vector<8x1xf32> to vector<8x256xf32>
    %39 = arith.addf %36, %38 : vector<8x256xf32>
    %c0_24 = arith.constant 0 : index
    %c0_25 = arith.constant 0 : index
    %40 = vector.load %arg8[%c0_24, %c0_25] : memref<8x256xf32, #tpu.memory_space<vmem>>, vector<8x256xf32>
    tpu.vector_store %arg8[%c0_24, %c0_25], %39 {strides = array<i32>} : memref<8x256xf32, #tpu.memory_space<vmem>>, vector<8x256xf32>,
    return
  }
  func.func @transform_0(%arg0: i32) -> (i32, i32) {
    %c0_i32 = arith.constant 0 : i32
    %c0_i32_0 = arith.constant 0 : i32
    return %c0_i32, %arg0 : i32, i32
  }
  func.func @transform_1(%arg0: i32) -> (i32, i32) {
    %c0_i32 = arith.constant 0 : i32
    %c0_i32_0 = arith.constant 0 : i32
    %c0_i32_1 = arith.constant 0 : i32
    return %c0_i32, %c0_i32_0 : i32, i32
  }
  func.func @transform_2(%arg0: i32) -> (i32, i32) {
    %c0_i32 = arith.constant 0 : i32
    %c0_i32_0 = arith.constant 0 : i32
    %c0_i32_1 = arith.constant 0 : i32
    return %c0_i32, %c0_i32_0 : i32, i32
  }
  func.func @transform_3(%arg0: i32) -> (i32, i32, i32) {
    %c0_i32 = arith.constant 0 : i32
    %c0_i32_0 = arith.constant 0 : i32
    %c0_i32_1 = arith.constant 0 : i32
    %c0_i32_2 = arith.constant 0 : i32
    return %c0_i32, %c0_i32_0, %c0_i32_1 : i32, i32, i32
  }
  func.func @transform_4(%arg0: i32) -> (i32, i32, i32) {
    %c0_i32 = arith.constant 0 : i32
    %c0_i32_0 = arith.constant 0 : i32
    %c0_i32_1 = arith.constant 0 : i32
    %c0_i32_2 = arith.constant 0 : i32
    return %c0_i32, %c0_i32_0, %c0_i32_1 : i32, i32, i32
  }
  func.func @transform_5(%arg0: i32) -> (i32, i32) {
    %c0_i32 = arith.constant 0 : i32
    %c0_i32_0 = arith.constant 0 : i32
    %c0_i32_1 = arith.constant 0 : i32
    return %c0_i32, %c0_i32_0 : i32, i32
  }
  func.func @transform_6(%arg0: i32) -> (i32, i32) {
    %c0_i32 = arith.constant 0 : i32
    %c0_i32_0 = arith.constant 0 : i32
    %c0_i32_1 = arith.constant 0 : i32
    return %c0_i32, %c0_i32_0 : i32, i32
  }
  func.func @transform_7(%arg0: i32) -> (i32, i32) {
    %c0_i32 = arith.constant 0 : i32
    %c0_i32_0 = arith.constant 0 : i32
    return %c0_i32, %arg0 : i32, i32
  }
}

</mosaic_0001>

<bundles_post_ra>
// kernel: tpu_custom_call.1
= control target key start
LH: loop header
LB: loop body
LE: loop exit
PB: predicated region body
PF: predicated region fallthrough
CT: control target
= control target key end

     0   :  { %12 = vsyncpa [#allocation3], 0  ;;  %s1190_s0 = inlined_call_operand.vmem [shape: f32[1,512], index: 0, kind: input, shape index: {}]   ;;  %s1191_s1 = inlined_call_operand.vmem [shape: f32[32,1], index: 1, kind: input, shape index: {}]   ;;  %s1192_s2 = inlined_call_operand.vmem [shape: f32[32,1], index: 2, kind: input, shape index: {}]   ;;  %s1193_s3 = inlined_call_operand.vmem [shape: f32[1,32,32], index: 3, kind: input, shape index: {}]   ;;  %s1194_s4 = inlined_call_operand.vmem [shape: f32[1,32,1], index: 4, kind: input, shape index: {}]   ;;  %s1195_s5 = inlined_call_operand.vmem [shape: f32[8,32], index: 5, kind: input, shape index: {}]   ;;  %s1196_s6 = inlined_call_operand.vmem [shape: f32[8,1], index: 6, kind: input, shape index: {}]   ;;  %s1197_s7 = inlined_call_operand.hbm [shape: f32[8,512], index: 7, kind: output, shape index: {}]  }
   0x1   :  { %14 = vsyncpa [#allocation3 + $0x1], 0  ;;  %s999_s24 = smov 0   ;;  %s1001_s25 = smov 0  }
   0x2   :  { %s1003_s26 = smov 0   ;;  %s1005_s27 = smov 0  }
   0x3 LB: > { %s1020_s28 = sadd.s32 4294967295, %s954_s27   ;;  %s751_s29 = sadd.s32 4294967294, %s954_s27   ;;  %s954_s27 = sphi %s1005_s27, %s1203_s27   ;;  %s950_s26 = sphi %s1003_s26, %s1202_s26   ;;  %s946_s25 = sphi %s1001_s25, %s1201_s25   ;;  %s942_s24 = sphi %s999_s24, %s1200_s24  }
   0x4   : > { %s1024_s30 = sadd.s32 1, %s954_s27   ;;  %s179_s8 = sadd.s32 1, %s950_s26 }
   0x5   : > { %s176_s9 = ssub.s32 %s954_s27, %s1024_s30  ;;  %p189_p0 = scmp.ne.s32.totalorder %s950_s26, %s946_s25 }
   0x6   : > { %p177_p1 = scmp.eq.s32.totalorder %s176_s9, 0  ;;  %p190_p2 = scmp.eq.s32.totalorder %s1020_s28, 1 }
   0x7   : > { %p195_p3 = scmp.ne.s32.totalorder %s946_s25, %s942_s24  ;;  %p196_p4 = scmp.eq.s32.totalorder %s751_s29, 1 }
   0x8   : > { %s1035_s10 = scalar_select %p177_p1, %s950_s26, %s179_s8  }
   0x9   : > { %p1037_p5 = por %p190_p2, %p189_p0  ;;  %p1041_p6 = por %p196_p4, %p195_p3 }
   0xa   : > { %p754_p7 = scmp.ge.s32.totalorder %s954_s27, 1  ;;  %p240_p8 = scmp.lt.s32.totalorder %s954_s27, 3 }
   0xc   : > { %p241_p9 = pnand %p754_p7, %p240_p8 }
   0xd   : > { %v323_v0 = vld [vmem:[%s1192_s2] sm:$0xff] (!%p241_p9)  ;;  %v956_v2 = vmov (!%p241_p9), 0   ;;  %v324_v3 = vld [vmem:[%s1192_s2 + $0x8] sm:$0xff] (!%p241_p9)  ;;  %v283_v5 = vld [vmem:[%s1191_s1 + $0x18] sm:$0xff] (!%p241_p9)  ;;  %v957_v14 = vmov (!%p241_p9), 0.0   ;;  %s756_s8 = sshll.u32 (!%p241_p9), %s1020_s28, 1  ;;  %v305_v15 = vlaneseq (!%p241_p9) }
   0xe   : > { %244 = sbr.rel (%p241_p9) target bundleno = 690 (0x2b2), region = 48  ;;  %v280_v1 = vld [vmem:[%s1191_s1] sm:$0xff] (!%p241_p9)  ;;  %827 = vset.pattern.permute.xlu1 (!%p241_p9), %v956_v2  ;;  %826 = vset.pattern.permute.xlu0 (!%p241_p9), %v956_v2  ;;  %v281_v4 = vld [vmem:[%s1191_s1 + $0x8] sm:$0xff] (!%p241_p9)  ;;  %v282_v6 = vld [vmem:[%s1191_s1 + $0x10] sm:$0xff] (!%p241_p9)  ;;  %p272_p10 = scmp.lt.s32.totalorder (!%p241_p9), %s756_s8, 3  ;;  %vm439_vm0 = vcmask (!%p241_p9), 261120  }
   0xf   : > { %329 = vperm.xlu1 (!%p241_p9), %827, %v323_v0   ;;  %286 = vperm.xlu0 (!%p241_p9), %826, %v280_v1   ;;  %v326_v7 = vld [vmem:[%s1192_s2 + $0x18] sm:$0xff] (!%p241_p9)  ;;  %v325_v8 = vld [vmem:[%s1192_s2 + $0x10] sm:$0xff] (!%p241_p9)  ;;  %v416_v9 = vld [vmem:[%s1194_s4 + $0x8] sm:$0xff] (!%p241_p9)  ;;  %v306_v17 = vshrl.u32 (!%p241_p9), %v305_v15, 7  ;;  %s768_s13 = sshll.u32 (!%p241_p9), %s1020_s28, 8  ;;  %s958_s20 = smov (!%p241_p9), [#allocation2]  }
  0x10   : > { %v415_v10 = vld [vmem:[%s1194_s4] sm:$0xff] (!%p241_p9)  ;;  %v418_v11 = vld [vmem:[%s1194_s4 + $0x18] sm:$0xff] (!%p241_p9)  ;;  %v417_v12 = vld [vmem:[%s1194_s4 + $0x10] sm:$0xff] (!%p241_p9)  ;;  %516 = vmatprep.mubr.f32.mxu0 (!%p241_p9), %v957_v14  ;;  %671 = vmatprep.mubr.f32.mxu1 (!%p241_p9), %v957_v14  ;;  %s1148_s18 = scalar_lea.hbm (!%p241_p9), %s1197_s7, %s768_s13  ;;  %s896_s21 = sshll.u32 (!%p241_p9), %s958_s20, 4  ;;  %s897_s21 = int_to_ptr.vmem [resolvable:$false] %s896_s21 }
  0x11   : > { %v598_v13 = vld [vmem:[%s1196_s6] sm:$0xff] (!%p241_p9)  ;;  %v307_v19 = vsub.s32 (!%p241_p9), 0, %v306_v17  ;;  %v311_v20 = vsub.s32 (!%p241_p9), 1, %v306_v17  ;;  %s898_s22 = scalar_lea.vmem (!%p241_p9), %s897_s21, 512 }
  0x13   : > { %334 = vperm.xlu1 (!%p241_p9), %827, %v324_v3   ;;  %291 = vperm.xlu0 (!%p241_p9), %826, %v281_v4  }
  0x15   : > { %s1205_s8 = smov (!%p272_p10, %s756_s8), 3 }
  0x16   : > { %s274_s14 = scalar_lea.vmem %s1190_s0, %s1205_s8  ;;  %s268_s8 = sand.u32 1, %s946_s25  }
  0x17   : > { %301 = vperm.xlu1 %827, %v283_v5   ;;  %296 = vperm.xlu0 %826, %v282_v6   ;;  %v277_v16 = vld [vmem:[%s274_s14] sm:$0x3]  ;;  %s755_s9 = sshll.u32 %s268_s8, 4  ;;  %s681_s28 = scalar_lea.sflag [#allocation3], %s268_s8 }
  0x18   : > { %v278_v18 = vmul.f32 0.34641016, %v277_v16  ;;  %s270_s14 = scalar_lea.vmem [#allocation2], %s755_s9 }
  0x19   : > { %s695_s15 = sshll.u32 %s270_s14, 4  ;;  %s1150_s15 = int_to_ptr.vmem [resolvable:$true] %s695_s15 }
  0x1a   : > { %v757_v21 = vadd.f32 -1.7320508, %v278_v18  ;;  %s892_s19 = scalar_lea.vmem %s1150_s15, 256  ;;  %p899_p0 = scmp.lt.s32.totalorder %s1150_s15, %s897_s21 }
  0x1b   : > { %344 = vperm.xlu1 %827, %v326_v7   ;;  %339 = vperm.xlu0 %826, %v325_v8   ;;  %p893_p11 = scmp.ne.s32.totalorder %s1150_s15, %s892_s19  ;;  %p900_p1 = scmp.lt.s32.totalorder %s898_s22, %s892_s19 }
  0x1c   : > { %v308_v22 = vrot.slane %v757_v21, %v307_v19  ;;  %v312_v23 = vrot.slane %v757_v21, %v311_v20 }
  0x1d   : > { %p894_p12 = pnand %p893_p11, %p1037_p5  ;;  %p901_p2 = por %p900_p1, %p899_p0 }
  0x1f   : > { %426 = vperm.xlu1 %827, %v416_v9   ;;  %421 = vperm.xlu0 %826, %v415_v10   ;;  %p895_p13 = pneg %p894_p12 }
  0x21   : > { %p902_p3 = pnand %p901_p2, %p895_p13 }
  0x23   : > { %436 = vperm.xlu1 %827, %v418_v11   ;;  %431 = vperm.xlu0 %826, %v417_v12  }
  0x27   : > { %601 = vperm.xlu0 %826, %v598_v13  }
  0x8e   : > { %v330_v24 = vpop.permute.xlu1 %329  ;;  %v287_v25 = vpop.permute.xlu0 %286 }
  0x8f   : > { %v315_v26 = vmul.f32 %v308_v22, %v287_v25  ;;  %v316_v27 = vmul.f32 %v312_v23, %v287_v25 }
  0x91   : > { %v1092_v28 = vadd.f32 %v330_v24, %v315_v26  ;;  %v1094_v29 = vadd.f32 %v330_v24, %v316_v27 }
  0x92   : > { %v335_v30 = vpop.permute.xlu1 %334  ;;  %v292_v31 = vpop.permute.xlu0 %291 }
  0x93   : > { %v355_v32 = vsub.f32 0.0, %v1092_v28  ;;  %v356_v33 = vsub.f32 0.0, %v1094_v29  ;;  %v317_v34 = vmul.f32 %v308_v22, %v292_v31  ;;  %v318_v35 = vmul.f32 %v312_v23, %v292_v31 }
  0x95   : > { %v363_v36 = vmul.f32 1.442695, %v355_v32  ;;  %v365_v37 = vmul.f32 1.442695, %v356_v33  ;;  %v1098_v38 = vadd.f32 %v335_v30, %v317_v34  ;;  %v1100_v39 = vadd.f32 %v335_v30, %v318_v35 }
  0x96   : > { %v302_v40 = vpop.permute.xlu1 %301  ;;  %v297_v41 = vpop.permute.xlu0 %296 }
  0x97   : > { %828 = vpow2.f32 %v363_v36  ;;  %v357_v42 = vsub.f32 0.0, %v1098_v38  ;;  %v358_v43 = vsub.f32 0.0, %v1100_v39  ;;  %v321_v44 = vmul.f32 %v308_v22, %v302_v40 }
  0x98   : > { %830 = vpow2.f32 %v365_v37  ;;  %v322_v47 = vmul.f32 %v312_v23, %v302_v40  ;;  %v319_v48 = vmul.f32 %v308_v22, %v297_v41  ;;  %v320_v49 = vmul.f32 %v312_v23, %v297_v41  ;;  %v414_v40 = vld [vmem:[%s1193_s3 + $0x18] sm:$0xff] }
  0x99   : > { %v367_v45 = vmul.f32 1.442695, %v357_v42  ;;  %v369_v46 = vmul.f32 1.442695, %v358_v43 }
  0x9a   : > { %v345_v50 = vpop.permute.xlu1 %344  ;;  %v340_v51 = vpop.permute.xlu0 %339 }
  0x9b   : > { %832 = vpow2.f32 %v367_v45  ;;  %v353_v52 = vadd.f32 %v345_v50, %v321_v44  ;;  %v354_v53 = vadd.f32 %v345_v50, %v322_v47  ;;  %v351_v54 = vadd.f32 %v340_v51, %v319_v48 }
  0x9c   : > { %834 = vpow2.f32 %v369_v46  ;;  %v352_v55 = vadd.f32 %v340_v51, %v320_v49 }
  0x9d   : > { %v361_v56 = vsub.f32 0.0, %v353_v52  ;;  %v362_v57 = vsub.f32 0.0, %v354_v53  ;;  %v359_v58 = vsub.f32 0.0, %v351_v54 }
  0x9e   : > { %v360_v59 = vsub.f32 0.0, %v352_v55  ;;  %v422_v41 = vpop.permute.xlu0 %421  ;;  %v427_v47 = vpop.permute.xlu1 %426 }
  0x9f   : > { %v375_v60 = vmul.f32 1.442695, %v361_v56  ;;  %v377_v61 = vmul.f32 1.442695, %v362_v57  ;;  %v371_v62 = vmul.f32 1.442695, %v359_v58 }
  0xa0   : > { %v373_v2 = vmul.f32 1.442695, %v360_v59 }
  0xa1   : > { %v829_v63 = vpop.eup %828  ;;  %836 = vpow2.f32 %v375_v60 }
  0xa2   : > { %v831_v0 = vpop.eup %830  ;;  %v379_v1 = vadd.f32 1.0, %v829_v63  ;;  %838 = vpow2.f32 %v377_v61 }
  0xa3   : > { %v380_v3 = vadd.f32 1.0, %v831_v0  ;;  %840 = vpow2.f32 %v371_v62  ;;  %v437_v0 = vpop.permute.xlu1 %436 }
  0xa4   : > { %842 = vrcp.f32 %v379_v1 }
  0xa5   : > { %v833_v4 = vpop.eup %832  ;;  %844 = vpow2.f32 %v373_v2 }
  0xa6   : > { %v835_v5 = vpop.eup %834  ;;  %v381_v6 = vadd.f32 1.0, %v833_v4  ;;  %846 = vrcp.f32 %v380_v3 }
  0xa7   : > { %v382_v7 = vadd.f32 1.0, %v835_v5 }
  0xa8   : > { %848 = vrcp.f32 %v381_v6 }
  0xa9   : > { %850 = vrcp.f32 %v382_v7 }
  0xab   : > { %v837_v8 = vpop.eup %836 }
  0xac   : > { %v839_v9 = vpop.eup %838  ;;  %v385_v10 = vadd.f32 1.0, %v837_v8 }
  0xad   : > { %v841_v11 = vpop.eup %840  ;;  %v386_v12 = vadd.f32 1.0, %v839_v9 }
  0xae   : > { %852 = vrcp.f32 %v385_v10  ;;  %v383_v13 = vadd.f32 1.0, %v841_v11  ;;  %v843_v15 = vpop.eup %842 }
  0xaf   : > { %854 = vrcp.f32 %v386_v12  ;;  %v845_v16 = vpop.eup %844  ;;  %v403_v21 = vmul.f32 %v843_v15, %v1092_v28 }
  0xb0   : > { %856 = vrcp.f32 %v383_v13  ;;  %v847_v17 = vpop.eup %846  ;;  %v384_v18 = vadd.f32 1.0, %v845_v16 }
  0xb1   : > { %v404_v23 = vmul.f32 %v847_v17, %v1094_v29  ;;  %v411_v29 = vld [vmem:[%s1193_s3] sm:$0xff] }
  0xb2   : > { %v849_v19 = vpop.eup %848  ;;  %858 = vrcp.f32 %v384_v18 }
  0xb3   : > { %v851_v20 = vpop.eup %850  ;;  %v405_v22 = vmul.f32 %v849_v19, %v1098_v38  ;;  %v412_v38 = vld [vmem:[%s1193_s3 + $0x8] sm:$0xff] }
  0xb4   : > { %v406_v24 = vmul.f32 %v851_v20, %v1100_v39  ;;  %v413_v39 = vld [vmem:[%s1193_s3 + $0x10] sm:$0xff] }
  0xb5   : > { %v771_v25 = vpack.c.bf16 %v405_v22, %v403_v21 }
  0xb6   : > { %v769_v26 = vpack.c.bf16 %v406_v24, %v404_v23 }
  0xb8   : > { %v853_v27 = vpop.eup %852  ;;  %770 = vmatprep.subr.bf16.mxu0 %v769_v26 }
  0xb9   : > { %v855_v30 = vpop.eup %854  ;;  %772 = vmatpush1.bf16.msra.mxu0 %v771_v25  ;;  %v409_v32 = vmul.f32 %v853_v27, %v353_v52 }
  0xba   : > { %v857_v31 = vpop.eup %856  ;;  %v410_v34 = vmul.f32 %v855_v30, %v354_v53 }
  0xbb   : > { %v407_v33 = vmul.f32 %v857_v31, %v351_v54 }
  0xbc   : > { %v859_v35 = vpop.eup %858 }
  0xbd   : > { %v408_v36 = vmul.f32 %v859_v35, %v352_v55  ;;  %v775_v37 = vpack.c.bf16 %v409_v32, %v407_v33  ;;  %v432_v55 = vpop.permute.xlu0 %431 }
  0xbf   : > { %v773_v28 = vpack.c.bf16 %v410_v34, %v408_v36 }
  0xc1   : > { %774 = vmatprep.subr.bf16.mxu0 %v773_v28 }
  0xc2   : > { %776 = vmatpush1.bf16.msra.mxu0 %v775_v37 }
  0xc5   : > { %758 = vmatmul.mubr.msk.f32.vlgmr.msra.gmra.mrb[0].mxu0 %vm439_vm0, %v411_v29 }
  0xc6   : > { %522 = vmatprep.mubr.f32.mxu0 %v957_v14 }
  0xc9   : > { %759 = vmatmul.mubr.msk.f32.gmra.mrb[2].mxu0 %vm439_vm0, %v412_v38 }
  0xca   : > { %528 = vmatprep.mubr.f32.mxu0 %v957_v14 }
  0xcd   : > { %760 = vmatmul.mubr.msk.f32.gmra.mrb[4].mxu0 %vm439_vm0, %v413_v39 }
  0xce   : > { %534 = vmatprep.mubr.f32.mxu0 %v957_v14 }
  0xd1   : > { %761 = vmatmul.mubr.msk.f32.gmra.mrb[6].mxu0 %vm439_vm0, %v414_v40 }
 0x198   : > { %v518_v42 = vpop.f32.mrb[0].mxu0 }
 0x199   : > { %v1127_v43 = vadd.f32 %v518_v42, %v422_v41  ;;  %v520_v44 = vpop.f32.mrb[1].mxu0 }
 0x19a   : > { %v1129_v45 = vadd.f32 %v520_v44, %v422_v41 }
 0x19b   : > { %v541_v46 = vsub.f32 0.0, %v1127_v43 }
 0x19c   : > { %v542_v48 = vsub.f32 0.0, %v1129_v45  ;;  %v524_v49 = vpop.f32.mrb[2].mxu0 }
 0x19d   : > { %v549_v14 = vmul.f32 1.442695, %v541_v46  ;;  %v525_v50 = vadd.f32 %v524_v49, %v427_v47  ;;  %v526_v51 = vpop.f32.mrb[3].mxu0 }
 0x19e   : > { %v551_v52 = vmul.f32 1.442695, %v542_v48  ;;  %v527_v53 = vadd.f32 %v526_v51, %v427_v47 }
 0x19f   : > { %860 = vpow2.f32 %v549_v14  ;;  %v543_v54 = vsub.f32 0.0, %v525_v50  ;;  %v602_v14 = vpop.permute.xlu0 %601 }
 0x1a0   : > { %862 = vpow2.f32 %v551_v52  ;;  %v544_v56 = vsub.f32 0.0, %v527_v53  ;;  %v530_v57 = vpop.f32.mrb[4].mxu0 }
 0x1a1   : > { %v553_v58 = vmul.f32 1.442695, %v543_v54  ;;  %v531_v59 = vadd.f32 %v530_v57, %v432_v55  ;;  %v532_v60 = vpop.f32.mrb[5].mxu0 }
 0x1a2   : > { %v555_v61 = vmul.f32 1.442695, %v544_v56  ;;  %v1133_v62 = vadd.f32 %v532_v60, %v432_v55 }
 0x1a3   : > { %864 = vpow2.f32 %v553_v58  ;;  %v545_v63 = vsub.f32 0.0, %v531_v59 }
 0x1a4   : > { %866 = vpow2.f32 %v555_v61  ;;  %v546_v1 = vsub.f32 0.0, %v1133_v62  ;;  %v536_v2 = vpop.f32.mrb[6].mxu0 }
 0x1a5   : > { %v557_v3 = vmul.f32 1.442695, %v545_v63  ;;  %v537_v4 = vadd.f32 %v536_v2, %v437_v0  ;;  %v538_v5 = vpop.f32.mrb[7].mxu0 }
 0x1a6   : > { %v559_v6 = vmul.f32 1.442695, %v546_v1  ;;  %v539_v7 = vadd.f32 %v538_v5, %v437_v0 }
 0x1a7   : > { %868 = vpow2.f32 %v557_v3  ;;  %v547_v8 = vsub.f32 0.0, %v537_v4 }
 0x1a8   : > { %870 = vpow2.f32 %v559_v6  ;;  %v548_v9 = vsub.f32 0.0, %v539_v7 }
 0x1a9   : > { %v861_v10 = vpop.eup %860  ;;  %v561_v11 = vmul.f32 1.442695, %v547_v8 }
 0x1aa   : > { %v863_v12 = vpop.eup %862  ;;  %v565_v13 = vadd.f32 1.0, %v861_v10  ;;  %v563_v15 = vmul.f32 1.442695, %v548_v9 }
 0x1ab   : > { %v566_v16 = vadd.f32 1.0, %v863_v12  ;;  %872 = vpow2.f32 %v561_v11 }
 0x1ac   : > { %874 = vrcp.f32 %v565_v13 }
 0x1ad   : > { %v865_v17 = vpop.eup %864  ;;  %876 = vpow2.f32 %v563_v15 }
 0x1ae   : > { %v867_v18 = vpop.eup %866  ;;  %v567_v19 = vadd.f32 1.0, %v865_v17  ;;  %878 = vrcp.f32 %v566_v16 }
 0x1af   : > { %v568_v20 = vadd.f32 1.0, %v867_v18 }
 0x1b0   : > { %880 = vrcp.f32 %v567_v19 }
 0x1b1   : > { %v869_v21 = vpop.eup %868  ;;  %882 = vrcp.f32 %v568_v20 }
 0x1b2   : > { %v871_v22 = vpop.eup %870  ;;  %v569_v23 = vadd.f32 1.0, %v869_v21 }
 0x1b3   : > { %v570_v25 = vadd.f32 1.0, %v871_v22 }
 0x1b4   : > { %884 = vrcp.f32 %v569_v23 }
 0x1b5   : > { %v873_v24 = vpop.eup %872 }
 0x1b6   : > { %v571_v26 = vadd.f32 1.0, %v873_v24  ;;  %v875_v27 = vpop.eup %874 }
 0x1b7   : > { %v877_v30 = vpop.eup %876  ;;  %v589_v35 = vmul.f32 %v875_v27, %v1127_v43 }
 0x1b8   : > { %886 = vrcp.f32 %v571_v26  ;;  %v879_v31 = vpop.eup %878  ;;  %v572_v32 = vadd.f32 1.0, %v877_v30 }
 0x1b9   : > { %888 = vrcp.f32 %v570_v25  ;;  %v590_v37 = vmul.f32 %v879_v31, %v1129_v45  ;;  %v597_v45 = vld [vmem:[%s1195_s5] sm:$0xff] }
 0x1ba   : > { %v881_v33 = vpop.eup %880  ;;  %890 = vrcp.f32 %v572_v32 }
 0x1bb   : > { %v883_v34 = vpop.eup %882  ;;  %v591_v36 = vmul.f32 %v881_v33, %v525_v50 }
 0x1bc   : > { %v592_v28 = vmul.f32 %v883_v34, %v527_v53 }
 0x1bd   : > { %v779_v29 = vpack.c.bf16 %v591_v36, %v589_v35 }
 0x1be   : > { %v777_v38 = vpack.c.bf16 %v592_v28, %v590_v37  ;;  %v885_v39 = vpop.eup %884 }
 0x1bf   : > { %v593_v42 = vmul.f32 %v885_v39, %v531_v59 }
 0x1c0   : > { %778 = vmatprep.subr.bf16.mxu1 %v777_v38 }
 0x1c1   : > { %780 = vmatpush1.bf16.msra.mxu1 %v779_v29 }
 0x1c2   : > { %v887_v40 = vpop.eup %886 }
 0x1c3   : > { %v889_v41 = vpop.eup %888  ;;  %v595_v44 = vmul.f32 %v887_v40, %v537_v4 }
 0x1c4   : > { %v891_v46 = vpop.eup %890  ;;  %v594_v43 = vmul.f32 %v889_v41, %v1133_v62 }
 0x1c5   : > { %v783_v47 = vpack.c.bf16 %v595_v44, %v593_v42  ;;  %v596_v48 = vmul.f32 %v891_v46, %v539_v7 }
 0x1c7   : > { %v781_v49 = vpack.c.bf16 %v596_v48, %v594_v43 }
 0x1c9   : > { %782 = vmatprep.subr.bf16.mxu1 %v781_v49 }
 0x1ca   : > { %784 = vmatpush1.bf16.msra.mxu1 %v783_v47 }
 0x1cd   : > { %762 = vmatmul.mubr.msk.f32.vlgmr.msra.gmra.mrb[0].mxu1 %vm439_vm0, %v597_v45 }
 0x2a0   : > { %v673_v50 = vpop.f32.mrb[0].mxu1 }
 0x2a1   : > { %v674_v51 = vadd.f32 %v673_v50, %v602_v14  ;;  %v675_v52 = vpop.f32.mrb[1].mxu1 }
 0x2a2   : > { %v676_v53 = vadd.f32 %v675_v52, %v602_v14 }
 0x2a3   : > { %678 = vst [vmem:[%s270_s14] sm:$0xff] %v674_v51 }
 0x2a4   : > { %679 = vst [vmem:[%s270_s14 + $0x8] sm:$0xff] %v676_v53 }
 0x2a5   : > { %905 = shalt.err (!%p902_p3)
}
 0x2a6   : > { %s906_s23 = scalar_lea.hbm %s1148_s18, 256  ;;  %s910_s9 = scalar_lea.hbm %s1197_s7, 512 }
 0x2a7   : > { %p907_p4 = scmp.ne.s32.totalorder %s1148_s18, %s906_s23  ;;  %p911_p9 = scmp.lt.u32.totalorder %s1148_s18, %s1197_s7 }
 0x2a8   : > { %p912_p10 = scmp.lt.u32.totalorder %s910_s9, %s906_s23  ;;  %p914_p12 = scmp.lt.u32.totalorder %s906_s23, %s1148_s18 }
 0x2a9   : > { %p908_p7 = pnand %p907_p4, %p1037_p5 }
 0x2aa   : > { %p913_p11 = por %p912_p10, %p911_p9 }
 0x2ab   : > { %p909_p8 = pneg %p908_p7 }
 0x2ac   : > { %p915_p13 = por %p914_p12, %p913_p11 }
 0x2ae   : > { %p916_p0 = pnand %p915_p13, %p909_p8 }
 0x2b0   : > { %919 = shalt.err (!%p916_p0)
}
 0x2b1   : > { %785 = dma.vmem_to_hbm [thread:$0]  (%p1037_p5), %s1150_s15, 256, %s1148_s18, %s681_s28  }
 0x2b2 PF: > { %p791_p1 = scmp.ge.s32.totalorder %s954_s27, 2  ;;  %s707_s16 = sand.u32 1, %s942_s24  }
 0x2b3   : > { %s708_s17 = scalar_lea.sflag [#allocation3], %s707_s16 }
 0x2b4   : > { %p788_p2 = pnand %p791_p1, %p1041_p6 }
 0x2b6   : > { %937 = dma.done.wait (!%p788_p2), %s708_s17, 256  }
 0x2b7   : > { %939 = vsyncadd (!%p788_p2), %s708_s17, 4294967040  ;;  %p17_p3 = scmp.ge.s32.totalorder %s1024_s30, 4   ;;  %s1200_s24 = smov %s946_s25 }
 0x2b8   : > { %s1201_s25 = smov %s950_s26  ;;  %s1202_s26 = smov %s1035_s10 }
 0x2b9   : > { %s1203_s27 = smov %s1024_s30  ;;  %19 = sbr.rel (!%p17_p3) target bundleno = 3 (0x3), region = 83 }
 0x2c0   :  { %713 = vsyncpa [#allocation3], 1 }
 0x2c1   :  { %715 = vsyncpa [#allocation3 + $0x1], 1 }

</bundles_post_ra>
